<compile_context>
chip_gen: v6e
topology: v6e:2x2x1
jax: 0.10.0
libtpu: 0.0.40
codegen_flags: <defaults>
</compile_context>

<pallas_src>
import functools

import jax
import jax.numpy as jnp
from jax.experimental import pallas as pl
from jax.experimental.pallas import tpu as pltpu

# ----- model hyper-parameters (small, consistent with the module) -----
INPUT_DIM = 32
HIDDEN_DIM = 64
OUTPUT_DIM = 32
NUM_LAYERS = 3
BATCH = 2
SEQ = 8

LANES = 128        # lane width of the packed parameter slab / padded activations
BIAS_ROWS = 8      # sublane-aligned bias block at the tail of the slab

# Perf-review item (v6e/v7x): cast MXU operands to bf16 (accumulate in f32).
# Kept off by default to preserve f32 nn.Linear numerics at these tiny K.
MXU_BF16 = False


# ---------------------------------------------------------------------------
# Pallas kernel: fully fused MLP (linear -> relu -> ... -> linear)
# ---------------------------------------------------------------------------
def _mlp_fused_kernel(x_ref, slab_ref, out_ref, *, num_layers, in_dim, mxu_bf16):
    """Fused MLP: (N, in_dim) -> (N, 128) lane-dense padded output.

    slab_ref layout (rows, 128), f32:
      rows [i*128, (i+1)*128)   : weight of layer i, zero-padded to (128, 128)
      rows [num_layers*128, +8) : row i = bias of layer i (zero-padded lanes)
    """
    bias_start = num_layers * LANES
    biases = slab_ref[bias_start:bias_start + BIAS_ROWS, :]        # (8, 128), one load

    h = x_ref[...]                                                  # (N, in_dim) f32
    for i in range(num_layers):                                     # static unroll
        if i == 0:
            w = slab_ref[0:in_dim, :]                               # (in_dim, 128)
        else:
            w = slab_ref[i * LANES:(i + 1) * LANES, :]              # (128, 128)
        b = biases[i:i + 1, :]                                      # (1, 128)
        lhs = h.astype(jnp.bfloat16) if mxu_bf16 else h
        rhs = w.astype(jnp.bfloat16) if mxu_bf16 else w
        h = jnp.dot(lhs, rhs, preferred_element_type=jnp.float32) + b
        if i < num_layers - 1:
            h = jnp.maximum(h, 0.0)                                 # ReLU (not on last)
    out_ref[...] = h.astype(out_ref.dtype)                          # lane-dense store


# ---------------------------------------------------------------------------
# Host-side parameter packing: one lane-dense zero-padded slab
# ---------------------------------------------------------------------------
def pack_mlp_params(params):
    """Pack all (w, b) into a (num_layers*128 + 8, 128) f32 slab (done once)."""
    blocks = []
    for (w, b) in params:
        assert w.shape[0] <= LANES and w.shape[1] <= LANES, "dims must fit 128 lanes"
        wp = jnp.zeros((LANES, LANES), jnp.float32)
        wp = wp.at[:w.shape[0], :w.shape[1]].set(w.astype(jnp.float32))
        blocks.append(wp)
    bias_blk = jnp.zeros((BIAS_ROWS, LANES), jnp.float32)
    for i, (_, b) in enumerate(params):
        bias_blk = bias_blk.at[i, :b.shape[-1]].set(b.reshape(-1).astype(jnp.float32))
    blocks.append(bias_blk)
    return jnp.concatenate(blocks, axis=0)


# ---------------------------------------------------------------------------
# Wrapper: fused pallas_call (grid-less for small N, parallel row grid for big N)
# ---------------------------------------------------------------------------
def mlp_forward(x, packed, *, in_dim, out_dim, num_layers, block_rows=512):
    """x: (..., in_dim) -> (..., out_dim).  `packed` from pack_mlp_params."""
    lead = x.shape[:-1]
    xf = x.reshape(-1, in_dim)                  # fold batch/seq into matmul rows
    n = xf.shape[0]
    slab_rows = packed.shape[0]
    kernel = functools.partial(_mlp_fused_kernel, num_layers=num_layers,
                               in_dim=in_dim, mxu_bf16=MXU_BF16)

    if n <= block_rows:
        # Grid-less, fully VMEM-resident, single invocation (2 input DMAs total).
        n_pad = -(-n // 8) * 8                  # f32 sublane alignment
        if n_pad != n:
            xf = jnp.pad(xf, ((0, n_pad - n), (0, 0)))
        out = pl.pallas_call(
            kernel,
            out_shape=jax.ShapeDtypeStruct((n_pad, LANES), jnp.float32),
            in_specs=[pl.BlockSpec((n_pad, in_dim), lambda: (0, 0)),
                      pl.BlockSpec((slab_rows, LANES), lambda: (0, 0))],
            out_specs=pl.BlockSpec((n_pad, LANES), lambda: (0, 0)),
        )(xf, packed)
    else:
        # Large N: parallel row grid (both v7x TensorCores); weight slab stays at a
        # constant block index so it is not re-staged per step; row tiles bounded
        # so VMEM use stays far under the 64 MiB (v7x) / 16 MiB-scoped (v5e) limits.
        n_pad = -(-n // block_rows) * block_rows
        if n_pad != n:
            xf = jnp.pad(xf, ((0, n_pad - n), (0, 0)))
        out = pl.pallas_call(
            kernel,
            out_shape=jax.ShapeDtypeStruct((n_pad, LANES), jnp.float32),
            grid=(n_pad // block_rows,),
            in_specs=[pl.BlockSpec((block_rows, in_dim), lambda i: (i, 0)),
                      pl.BlockSpec((slab_rows, LANES), lambda i: (0, 0))],
            out_specs=pl.BlockSpec((block_rows, LANES), lambda i: (i, 0)),
            compiler_params=pltpu.CompilerParams(
                dimension_semantics=("parallel",)),
        )(xf, packed)

    return out[:n, :out_dim].reshape(*lead, out_dim)


# ---------------------------------------------------------------------------
# Deterministic parameter initialization (torch nn.Linear-style)
# ---------------------------------------------------------------------------
def init_mlp_params(key, input_dim, hidden_dim, output_dim, num_layers):
    h = [hidden_dim] * (num_layers - 1)
    in_dims = [input_dim] + h
    out_dims = h + [output_dim]
    params = []
    for n, k in zip(in_dims, out_dims):
        key, kw, kb = jax.random.split(key, 3)
        bound = 1.0 / (n ** 0.5)
        w = jax.random.uniform(kw, (n, k), jnp.float32, -bound, bound)
        b = jax.random.uniform(kb, (1, k), jnp.float32, -bound, bound)
        params.append((w, b))
    return params


def mlp_reference(x, params):
    """Plain-JAX reference for correctness checking."""
    h = x
    n_layers = len(params)
    for i, (w, b) in enumerate(params):
        h = jnp.dot(h, w) + b
        if i < n_layers - 1:
            h = jnp.maximum(h, 0.0)
    return h


# ---------------------------------------------------------------------------
if __name__ == "__main__":
    key = jax.random.PRNGKey(0)
    k_x, k_p, k_x2 = jax.random.split(key, 3)

    params = init_mlp_params(k_p, INPUT_DIM, HIDDEN_DIM, OUTPUT_DIM, NUM_LAYERS)
    packed = pack_mlp_params(params)
    tol = 2e-2 if MXU_BF16 else 1e-4

    # Small DETR-like shape (batch, queries, d_model) — grid-less fused path.
    x = jax.random.normal(k_x, (BATCH, SEQ, INPUT_DIM), jnp.float32)
    out = mlp_forward(x, packed, in_dim=INPUT_DIM, out_dim=OUTPUT_DIM,
                      num_layers=NUM_LAYERS)
    out = jax.block_until_ready(out)
    assert out.shape == (BATCH, SEQ, OUTPUT_DIM), out.shape
    assert bool(jnp.all(jnp.isfinite(out)))
    ref = mlp_reference(x, params)
    assert bool(jnp.allclose(out, ref, atol=tol, rtol=tol)), "mismatch (fused path)"

    # Larger, non-multiple row count exercising the parallel row-grid path.
    x2 = jax.random.normal(k_x2, (4, 100, INPUT_DIM), jnp.float32)
    out2 = mlp_forward(x2, packed, in_dim=INPUT_DIM, out_dim=OUTPUT_DIM,
                       num_layers=NUM_LAYERS, block_rows=128)
    out2 = jax.block_until_ready(out2)
    assert out2.shape == (4, 100, OUTPUT_DIM), out2.shape
    ref2 = mlp_reference(x2, params)
    assert bool(jnp.allclose(out2, ref2, atol=tol, rtol=tol)), "mismatch (tiled path)"

    print("KERNEL_OK")
</pallas_src>

<mosaic_0001>
module attributes {stable_mosaic.version = 11 : i64} {
  func.func @_mlp_fused_kernel(%arg0: memref<16x32xf32, #tpu.memory_space<vmem>>, %arg1: memref<392x128xf32, #tpu.memory_space<vmem>>, %arg2: memref<16x128xf32, #tpu.memory_space<vmem>>) attributes {dimension_semantics = [], scalar_prefetch = 0 : i64, scratch_operands = 0 : i64, tpu.core_type = #tpu.core_type<tc>} {
    %c384 = arith.constant 384 : index
    %c0 = arith.constant 0 : index
    %0 = vector.load %arg1[%c384, %c0] : memref<392x128xf32, #tpu.memory_space<vmem>>, vector<8x128xf32>
    %c0_0 = arith.constant 0 : index
    %c0_1 = arith.constant 0 : index
    %1 = vector.load %arg0[%c0_0, %c0_1] : memref<16x32xf32, #tpu.memory_space<vmem>>, vector<16x32xf32>
    %c0_2 = arith.constant 0 : index
    %c0_3 = arith.constant 0 : index
    %2 = vector.load %arg1[%c0_2, %c0_3] : memref<392x128xf32, #tpu.memory_space<vmem>>, vector<32x128xf32>
    %3 = vector.extract_strided_slice %0 {offsets = [0, 0], sizes = [1, 128], strides = [1, 1]} : vector<8x128xf32> to vector<1x128xf32>
    %cst = arith.constant dense<0.000000e+00> : vector<16x128xf32>
    %4 = tpu.matmul %1, %2, %cst {dimension_numbers = #tpu.dot_dimension_numbers<[1], [0], [0], [1], [0, 0, 1, 1], [], []>} : vector<16x32xf32>, vector<32x128xf32>, vector<16x128xf32> -> vector<16x128xf32>
    %5 = vector.broadcast %3 : vector<1x128xf32> to vector<16x128xf32>
    %6 = arith.addf %4, %5 : vector<16x128xf32>
    %cst_4 = arith.constant 0.000000e+00 : f32
    %7 = vector.broadcast %cst_4 : f32 to vector<16x128xf32>
    %8 = arith.maximumf %6, %7 : vector<16x128xf32>
    %c128 = arith.constant 128 : index
    %c0_5 = arith.constant 0 : index
    %9 = vector.load %arg1[%c128, %c0_5] : memref<392x128xf32, #tpu.memory_space<vmem>>, vector<128x128xf32>
    %10 = vector.extract_strided_slice %0 {offsets = [1, 0], sizes = [1, 128], strides = [1, 1]} : vector<8x128xf32> to vector<1x128xf32>
    %cst_6 = arith.constant dense<0.000000e+00> : vector<16x128xf32>
    %11 = tpu.matmul %8, %9, %cst_6 {dimension_numbers = #tpu.dot_dimension_numbers<[1], [0], [0], [1], [0, 0, 1, 1], [], []>} : vector<16x128xf32>, vector<128x128xf32>, vector<16x128xf32> -> vector<16x128xf32>
    %12 = vector.broadcast %10 : vector<1x128xf32> to vector<16x128xf32>
    %13 = arith.addf %11, %12 : vector<16x128xf32>
    %cst_7 = arith.constant 0.000000e+00 : f32
    %14 = vector.broadcast %cst_7 : f32 to vector<16x128xf32>
    %15 = arith.maximumf %13, %14 : vector<16x128xf32>
    %c256 = arith.constant 256 : index
    %c0_8 = arith.constant 0 : index
    %16 = vector.load %arg1[%c256, %c0_8] : memref<392x128xf32, #tpu.memory_space<vmem>>, vector<128x128xf32>
    %17 = vector.extract_strided_slice %0 {offsets = [2, 0], sizes = [1, 128], strides = [1, 1]} : vector<8x128xf32> to vector<1x128xf32>
    %cst_9 = arith.constant dense<0.000000e+00> : vector<16x128xf32>
    %18 = tpu.matmul %15, %16, %cst_9 {dimension_numbers = #tpu.dot_dimension_numbers<[1], [0], [0], [1], [0, 0, 1, 1], [], []>} : vector<16x128xf32>, vector<128x128xf32>, vector<16x128xf32> -> vector<16x128xf32>
    %19 = vector.broadcast %17 : vector<1x128xf32> to vector<16x128xf32>
    %20 = arith.addf %18, %19 : vector<16x128xf32>
    %c0_10 = arith.constant 0 : index
    %c0_11 = arith.constant 0 : index
    %21 = vector.load %arg2[%c0_10, %c0_11] : memref<16x128xf32, #tpu.memory_space<vmem>>, vector<16x128xf32>
    tpu.vector_store %arg2[%c0_10, %c0_11], %20 {strides = array<i32>} : memref<16x128xf32, #tpu.memory_space<vmem>>, vector<16x128xf32>,
    return
  }
}

</mosaic_0001>

<bundles_post_ra>
// kernel: tpu_custom_call.1
= control target key start
LH: loop header
LB: loop body
LE: loop exit
PB: predicated region body
PF: predicated region fallthrough
CT: control target
= control target key end

     0   :  { %7 = vsyncpa [#allocation3], 0  ;;  %s583_s0 = inlined_call_operand.hbm [shape: f32[16,32], index: 0, kind: input, shape index: {}]   ;;  %s584_s1 = inlined_call_operand.hbm [shape: f32[392,128], index: 1, kind: input, shape index: {}]   ;;  %s585_s2 = inlined_call_operand.hbm [shape: f32[16,128], index: 2, kind: output, shape index: {}]  }
   0x1   :  { %8 = vsyncpa [#allocation6], 0 }
   0x2   :  { %9 = vsyncpa [#allocation4], 0  ;;  %s543_s9 = smov [#allocation2]  }
   0x3   :  { %s15_s10 = sshll.u32 %s543_s9, 4  ;;  %s16_s10 = int_to_ptr.vmem [resolvable:$true] %s15_s10 }
   0x4   :  { %s485_s11 = scalar_lea.vmem %s16_s10, 256  ;;  %p490_p1 = scmp.lt.s32.totalorder %s16_s10, %s16_s10 }
   0x5   :  { %p486_p0 = scmp.ne.s32.totalorder %s16_s10, %s485_s11  ;;  %p491_p2 = scmp.lt.s32.totalorder %s485_s11, %s485_s11 }
   0x7   :  { %p492_p3 = por %p491_p2, %p490_p1 }
   0x9   :  { %p493_p4 = pnand %p492_p3, %p486_p0 }
   0xb   :  { %496 = shalt.err (!%p493_p4)
}
   0xc   :  { %s544_s12 = smov 128   ;;  %s545_s13 = smov 8  }
   0xd   :  { %21 = dma.hbm_to_vmem [thread:$0]  %s583_s0, 256, %s16_s10, [#allocation3], %s544_s12, %s544_s12, %s545_s13  }
   0xe   :  { %s546_s16 = smov [#allocation5]  }
   0xf   :  { %s27_s17 = sshll.u32 %s546_s16, 4  ;;  %s28_s17 = int_to_ptr.vmem [resolvable:$true] %s27_s17 }
  0x10   :  { %s505_s18 = scalar_lea.vmem %s28_s17, 6272  ;;  %p510_p6 = scmp.lt.s32.totalorder %s28_s17, %s28_s17 }
  0x11   :  { %p506_p5 = scmp.ne.s32.totalorder %s28_s17, %s505_s18  ;;  %p511_p7 = scmp.lt.s32.totalorder %s505_s18, %s505_s18 }
  0x13   :  { %p512_p8 = por %p511_p7, %p510_p6 }
  0x15   :  { %p513_p9 = pnand %p512_p8, %p506_p5 }
  0x17   :  { %516 = shalt.err (!%p513_p9)
}
  0x18   :  { %33 = dma.hbm_to_vmem [thread:$0]  %s584_s1, 6272, %s28_s17, [#allocation6], %s544_s12, %s544_s12, %s545_s13  }
  0x19   :  { %537 = dma.done.wait [#allocation3], 256  }
  0x1a   :  { %538 = vsyncadd [#allocation3], 4294967040 }
  0x1b   :  { %539 = dma.done.wait [#allocation6], 6272  }
  0x1c   :  { %540 = vsyncadd [#allocation6], 4294961024  ;;  %vm51_vm0 = vcmask 261120   ;;  %v46_v0 = vld [vmem:[#allocation5 + $0x18] sm:$0xff]  ;;  %v45_v1 = vld [vmem:[#allocation5 + $0x10] sm:$0xff]  ;;  %v47_v34 = vlaneseq  ;;  %s547_s0 = smov [#allocation7]  }
  0x1d   :  { %391 = vmatprep.subr.mxu0 %v46_v0  ;;  %v41_v2 = vld [vmem:[#allocation2] sm:$0xff]  ;;  %v44_v3 = vld [vmem:[#allocation5 + $0x8] sm:$0xff]  ;;  %v150_v4 = vld [vmem:[#allocation5 + $0xf8] sm:$0xff]  ;;  %s334_s1 = sshll.u32 %s547_s0, 4  ;;  %s335_s1 = int_to_ptr.vmem [resolvable:$true] %s334_s1 }
  0x1e   :  { %392 = vmatpush3.msra.mxu0 %v46_v0  ;;  %399 = vmatprep.mubr.msk.f32.mxu0 %vm51_vm0, %v41_v2  ;;  %v149_v5 = vld [vmem:[#allocation5 + $0xf0] sm:$0xff]  ;;  %v43_v6 = vld [vmem:[#allocation5] sm:$0xff]  ;;  %v148_v7 = vld [vmem:[#allocation5 + $0xe8] sm:$0xff]  ;;  %v48_v35 = vshrl.u32 %v47_v34, 7  ;;  %s517_s21 = scalar_lea.vmem %s335_s1, 256  ;;  %p522_p11 = scmp.lt.s32.totalorder %s335_s1, %s335_s1 }
  0x1f   :  { %393 = vmatprep.subr.mxu0 %v45_v1  ;;  %402 = vmatprep.subr.mxu1 %v150_v4  ;;  %v42_v8 = vld [vmem:[#allocation2 + $0x8] sm:$0xff]  ;;  %v147_v9 = vld [vmem:[#allocation5 + $0xe0] sm:$0xff]  ;;  %v145_v11 = vld [vmem:[#allocation5 + $0xd0] sm:$0xff]  ;;  %p518_p10 = scmp.ne.s32.totalorder %s335_s1, %s517_s21  ;;  %p523_p12 = scmp.lt.s32.totalorder %s517_s21, %s517_s21 }
  0x20   :  { %394 = vmatpush3.msra.mxu0 %v45_v1  ;;  %403 = vmatpush3.msra.mxu1 %v150_v4  ;;  %v146_v10 = vld [vmem:[#allocation5 + $0xd8] sm:$0xff]  ;;  %v144_v12 = vld [vmem:[#allocation5 + $0xc8] sm:$0xff]  ;;  %v143_v13 = vld [vmem:[#allocation5 + $0xc0] sm:$0xff]  ;;  %v49_v36 = vsub.s32 0, %v48_v35  ;;  %v153_v49 = vsub.s32 1, %v48_v35  ;;  %v250_v57 = vsub.s32 2, %v48_v35 }
  0x21   :  { %395 = vmatprep.subr.mxu0 %v44_v3  ;;  %404 = vmatprep.subr.mxu1 %v149_v5  ;;  %v142_v14 = vld [vmem:[#allocation5 + $0xb8] sm:$0xff]  ;;  %v141_v15 = vld [vmem:[#allocation5 + $0xb0] sm:$0xff]  ;;  %v140_v16 = vld [vmem:[#allocation5 + $0xa8] sm:$0xff]  ;;  %p524_p13 = por %p523_p12, %p522_p11 }
  0x22   :  { %396 = vmatpush3.msra.mxu0 %v44_v3  ;;  %405 = vmatpush3.msra.mxu1 %v149_v5  ;;  %v139_v17 = vld [vmem:[#allocation5 + $0xa0] sm:$0xff]  ;;  %v138_v18 = vld [vmem:[#allocation5 + $0x98] sm:$0xff]  ;;  %v137_v19 = vld [vmem:[#allocation5 + $0x90] sm:$0xff] }
  0x23   :  { %397 = vmatprep.subr.mxu0 %v43_v6  ;;  %406 = vmatprep.subr.mxu1 %v148_v7  ;;  %v136_v20 = vld [vmem:[#allocation5 + $0x88] sm:$0xff]  ;;  %v135_v21 = vld [vmem:[#allocation5 + $0x80] sm:$0xff]  ;;  %v247_v22 = vld [vmem:[#allocation5 + $0x178] sm:$0xff]  ;;  %p525_p0 = pnand %p524_p13, %p518_p10 }
  0x24   :  { %398 = vmatpush3.msra.mxu0 %v43_v6  ;;  %407 = vmatpush3.msra.mxu1 %v148_v7  ;;  %v246_v23 = vld [vmem:[#allocation5 + $0x170] sm:$0xff]  ;;  %v245_v24 = vld [vmem:[#allocation5 + $0x168] sm:$0xff]  ;;  %v244_v25 = vld [vmem:[#allocation5 + $0x160] sm:$0xff] }
  0x25   :  { %400 = vmatmul.mubr.msk.f32.vlgmr.msra.gmra.mxu0 %vm51_vm0, %v42_v8  ;;  %408 = vmatprep.subr.mxu1 %v147_v9  ;;  %v243_v26 = vld [vmem:[#allocation5 + $0x158] sm:$0xff]  ;;  %v242_v27 = vld [vmem:[#allocation5 + $0x150] sm:$0xff]  ;;  %v241_v28 = vld [vmem:[#allocation5 + $0x148] sm:$0xff] }
  0x26   :  { %409 = vmatpush3.msra.mxu1 %v147_v9  ;;  %437 = vmatprep.subr.mxu0 %v247_v22  ;;  %v240_v29 = vld [vmem:[#allocation5 + $0x140] sm:$0xff]  ;;  %v239_v30 = vld [vmem:[#allocation5 + $0x138] sm:$0xff]  ;;  %v238_v31 = vld [vmem:[#allocation5 + $0x130] sm:$0xff] }
  0x27   :  { %410 = vmatprep.subr.mxu1 %v146_v10  ;;  %438 = vmatpush3.msra.mxu0 %v247_v22  ;;  %v237_v32 = vld [vmem:[#allocation5 + $0x128] sm:$0xff]  ;;  %v236_v33 = vld [vmem:[#allocation5 + $0x120] sm:$0xff]  ;;  %v235_v45 = vld [vmem:[#allocation5 + $0x118] sm:$0xff] }
  0x28   :  { %411 = vmatpush3.msra.mxu1 %v146_v10  ;;  %439 = vmatprep.subr.mxu0 %v246_v23  ;;  %v40_v37 = vld [vmem:[#allocation5 + $0x180] sm:$0xff]  ;;  %v234_v46 = vld [vmem:[#allocation5 + $0x110] sm:$0xff]  ;;  %v233_v47 = vld [vmem:[#allocation5 + $0x108] sm:$0xff] }
  0x29   :  { %412 = vmatprep.subr.mxu1 %v145_v11  ;;  %440 = vmatpush3.msra.mxu0 %v246_v23  ;;  %v50_v38 = vrot.slane %v40_v37, %v49_v36  ;;  %v232_v48 = vld [vmem:[#allocation5 + $0x100] sm:$0xff]  ;;  %v154_v50 = vrot.slane %v40_v37, %v153_v49  ;;  %v251_v58 = vrot.slane %v40_v37, %v250_v57 }
  0x2a   :  { %413 = vmatpush3.msra.mxu1 %v145_v11  ;;  %441 = vmatprep.subr.mxu0 %v245_v24 }
  0x2b   :  { %414 = vmatprep.subr.mxu1 %v144_v12  ;;  %442 = vmatpush3.msra.mxu0 %v245_v24 }
  0x2c   :  { %415 = vmatpush3.msra.mxu1 %v144_v12  ;;  %443 = vmatprep.subr.mxu0 %v244_v25 }
  0x2d   :  { %416 = vmatprep.subr.mxu1 %v143_v13  ;;  %444 = vmatpush3.msra.mxu0 %v244_v25 }
  0x2e   :  { %417 = vmatpush3.msra.mxu1 %v143_v13  ;;  %445 = vmatprep.subr.mxu0 %v243_v26 }
  0x2f   :  { %418 = vmatprep.subr.mxu1 %v142_v14  ;;  %446 = vmatpush3.msra.mxu0 %v243_v26 }
  0x30   :  { %419 = vmatpush3.msra.mxu1 %v142_v14  ;;  %447 = vmatprep.subr.mxu0 %v242_v27 }
  0x31   :  { %420 = vmatprep.subr.mxu1 %v141_v15  ;;  %448 = vmatpush3.msra.mxu0 %v242_v27 }
  0x32   :  { %421 = vmatpush3.msra.mxu1 %v141_v15  ;;  %449 = vmatprep.subr.mxu0 %v241_v28 }
  0x33   :  { %422 = vmatprep.subr.mxu1 %v140_v16  ;;  %450 = vmatpush3.msra.mxu0 %v241_v28 }
  0x34   :  { %423 = vmatpush3.msra.mxu1 %v140_v16  ;;  %451 = vmatprep.subr.mxu0 %v240_v29 }
  0x35   :  { %424 = vmatprep.subr.mxu1 %v139_v17  ;;  %452 = vmatpush3.msra.mxu0 %v240_v29 }
  0x36   :  { %425 = vmatpush3.msra.mxu1 %v139_v17  ;;  %453 = vmatprep.subr.mxu0 %v239_v30 }
  0x37   :  { %426 = vmatprep.subr.mxu1 %v138_v18  ;;  %454 = vmatpush3.msra.mxu0 %v239_v30 }
  0x38   :  { %427 = vmatpush3.msra.mxu1 %v138_v18  ;;  %455 = vmatprep.subr.mxu0 %v238_v31 }
  0x39   :  { %428 = vmatprep.subr.mxu1 %v137_v19  ;;  %456 = vmatpush3.msra.mxu0 %v238_v31 }
  0x3a   :  { %429 = vmatpush3.msra.mxu1 %v137_v19  ;;  %457 = vmatprep.subr.mxu0 %v237_v32 }
  0x3b   :  { %430 = vmatprep.subr.mxu1 %v136_v20  ;;  %458 = vmatpush3.msra.mxu0 %v237_v32 }
  0x3c   :  { %431 = vmatpush3.msra.mxu1 %v136_v20  ;;  %459 = vmatprep.subr.mxu0 %v236_v33 }
  0x3d   :  { %432 = vmatprep.subr.mxu1 %v135_v21  ;;  %460 = vmatpush3.msra.mxu0 %v236_v33 }
  0x3e   :  { %433 = vmatpush3.msra.mxu1 %v135_v21  ;;  %461 = vmatprep.subr.mxu0 %v235_v45 }
  0x3f   :  { %462 = vmatpush3.msra.mxu0 %v235_v45 }
  0x40   :  { %463 = vmatprep.subr.mxu0 %v234_v46 }
  0x41   :  { %464 = vmatpush3.msra.mxu0 %v234_v46 }
  0x42   :  { %465 = vmatprep.subr.mxu0 %v233_v47 }
  0x43   :  { %466 = vmatpush3.msra.mxu0 %v233_v47 }
  0x44   :  { %467 = vmatprep.subr.mxu0 %v232_v48 }
  0x45   :  { %468 = vmatpush3.msra.mxu0 %v232_v48 }
  0xe5   :  { %v401_v39 = vpop.f32.mrf.mxu0 }
  0xe6   :  { %v130_v40 = vadd.f32 %v401_v39, %v50_v38 }
  0xe7   :  { %v124_v41 = vpop.f32.mrf.mxu0 }
  0xe8   :  { %v125_v42 = vadd.f32 %v124_v41, %v50_v38  ;;  %v134_v44 = vmax.f32 %v130_v40, 0.0 }
  0xea   :  { %v133_v43 = vmax.f32 %v125_v42, 0.0 }
  0xec   :  { %434 = vmatprep.mubr.f32.mxu1 %v133_v43 }
  0xed   :  { %435 = vmatmul.mubr.f32.vlgmr.msra.gmra.mxu1 %v134_v44 }
 0x1ad   :  { %v436_v51 = vpop.f32.mrf.mxu1 }
 0x1ae   :  { %v227_v52 = vadd.f32 %v436_v51, %v154_v50 }
 0x1af   :  { %v221_v53 = vpop.f32.mrf.mxu1 }
 0x1b0   :  { %v222_v54 = vadd.f32 %v221_v53, %v154_v50  ;;  %v231_v56 = vmax.f32 %v227_v52, 0.0 }
 0x1b2   :  { %v230_v55 = vmax.f32 %v222_v54, 0.0 }
 0x1b4   :  { %469 = vmatprep.mubr.f32.mxu0 %v230_v55 }
 0x1b5   :  { %470 = vmatmul.mubr.f32.vlgmr.msra.gmra.mxu0 %v231_v56 }
 0x275   :  { %v471_v59 = vpop.f32.mrf.mxu0 }
 0x276   :  { %v324_v60 = vadd.f32 %v471_v59, %v251_v58 }
 0x277   :  { %v318_v61 = vpop.f32.mrf.mxu0 }
 0x278   :  { %328 = vst [vmem:[#allocation7 + $0x8] sm:$0xff] %v324_v60  ;;  %v319_v62 = vadd.f32 %v318_v61, %v251_v58 }
 0x27a   :  { %327 = vst [vmem:[#allocation7] sm:$0xff] %v319_v62 }
 0x27b   :  { %528 = shalt.err (!%p525_p0)
}
 0x27c   :  { %340 = dma.vmem_to_hbm [thread:$0]  %s335_s1, 256, %s585_s2, [#allocation4], %s544_s12, %s544_s12, %s545_s13  }
 0x27d   :  { %541 = dma.done.wait [#allocation4], 256  }
 0x27e   :  { %542 = vsyncadd [#allocation4], 4294967040 }
 0x27f   :  { %344 = vsyncpa [#allocation3], 1 }
 0x280   :  { %345 = vsyncpa [#allocation6], 1 }
 0x281   :  { %346 = vsyncpa [#allocation4], 1 }

</bundles_post_ra>
